<compile_context>
chip_gen: v5e
topology: v5e:2x2
jax: 0.10.0
libtpu: 0.0.40
codegen_flags: <defaults>
</compile_context>

<pallas_src>
import functools

import jax
import jax.numpy as jnp
from jax.experimental import pallas as pl
from jax.experimental.pallas import tpu as pltpu


# ----------------------------- Pallas kernel ---------------------------------

def _sigmoid(z):
    # exp goes to the EUP; exact divide kept (gate arrays are a few elements,
    # so the divide cost is nil and we keep full f32 accuracy).
    return 1.0 / (1.0 + jnp.exp(-z))


def _se_kernel(x_ref, p_ref, o_ref, *, tb, c, cr, inv_hw):
    """One grid step = `tb` images as a sublane-dense (tb*c, HW) tile."""
    x = x_ref[...]                                    # (tb*c, HW), native dtype
    xf = x.astype(jnp.float32)                        # math in f32 (v5e: no bf16 VPU)

    # ---- squeeze: global average pool over spatial (lane reduction) ---------
    pooled = jnp.sum(xf, axis=-1, keepdims=True) * inv_hw         # (tb*c, 1)

    # ---- unpack resident weights (single packed input -> one DMA) -----------
    w1t = p_ref[0:c, 0:cr]                            # (c, cr)  = conv1 weight^T
    w2 = p_ref[0:c, cr:2 * cr]                        # (c, cr)  = conv2 weight
    b2 = p_ref[0:c, 2 * cr:2 * cr + 1]                # (c, 1)
    b1 = p_ref[c:c + 1, 0:cr]                         # (1, cr)

    # ---- excitation: two tiny FCs per image (VPU broadcast + XLU reduce) ----
    # TODO(synk): for real SE channel counts (C >= 256, Cr = C/16) switch these
    # to a batched jnp.dot(pooled_2d, w, preferred_element_type=f32) on the MXU.
    gates = []
    for b in range(tb):
        p_b = pooled[b * c:(b + 1) * c, :]                         # (c, 1)
        h = jnp.sum(p_b * w1t, axis=0, keepdims=True) + b1         # (1, cr)
        h = h * _sigmoid(h)                                        # SiLU
        g = jnp.sum(h * w2, axis=1, keepdims=True) + b2            # (c, 1)
        gates.append(_sigmoid(g))
    g_all = gates[0] if tb == 1 else jnp.concatenate(gates, axis=0)  # (tb*c, 1)

    # ---- scale: per-channel gate broadcast along the lane (spatial) axis ----
    o_ref[...] = (xf * g_all).astype(o_ref.dtype)


# ------------------------------- wrapper --------------------------------------

def _choose_batch_tile(n, per_image_bytes,
                       target_block_bytes=2 << 20,
                       vmem_budget_bytes=24 << 20,
                       max_unrolled_images=128):
    """Pick how many images go into one block."""
    tb = max(1, target_block_bytes // per_image_bytes)
    # in + out, double buffered, must stay well inside every generation's VMEM
    # (v7x only has 64 MiB total; 24 MiB of block buffers leaves headroom).
    tb = min(tb, max(1, vmem_budget_bytes // (4 * per_image_bytes)))
    tb = min(tb, max_unrolled_images)        # bound the unrolled gate loop
    if n >= 2:
        tb = min(tb, n // 2)                 # keep >= 2 grid steps (v7x: 2 TCs)
    tb = max(1, min(tb, n))
    while n % tb:                            # exact blocks, no ragged last step
        tb -= 1
    return int(tb)


def se_block_pallas(x_nchw, params):
    """Pallas implementation of SEBlock.forward.  x_nchw: [N, C, H, W]."""
    N, C, H, W = x_nchw.shape
    HW = H * W
    Cr = params["w1"].shape[0]                      # channels // reduction
    dtype = x_nchw.dtype
    itemsize = jnp.dtype(dtype).itemsize

    tb = _choose_batch_tile(N, C * HW * itemsize)
    n_steps = N // tb

    # Native-dtype I/O, sublane-dense layout: (n_steps, tb*C, HW).
    x3 = x_nchw.reshape(n_steps, tb * C, HW)

    # Pack w1^T, w2, b2, b1 into one small resident parameter tile:
    #   rows 0..C-1 : [ w1^T (C,Cr) | w2 (C,Cr) | b2 (C,1) ]
    #   row  C      : [ b1 (Cr,)    |   zeros              ]
    w1t = params["w1"][:, :, 0, 0].T.astype(jnp.float32)   # (C, Cr)
    w2 = params["w2"][:, :, 0, 0].astype(jnp.float32)      # (C, Cr)
    b1 = params["b1"].astype(jnp.float32)                  # (Cr,)
    b2 = params["b2"].astype(jnp.float32)                  # (C,)
    packed = jnp.zeros((C + 1, 2 * Cr + 1), jnp.float32)
    packed = packed.at[0:C, 0:Cr].set(w1t)
    packed = packed.at[0:C, Cr:2 * Cr].set(w2)
    packed = packed.at[0:C, 2 * Cr].set(b2)
    packed = packed.at[C, 0:Cr].set(b1)

    kernel = functools.partial(_se_kernel, tb=tb, c=C, cr=Cr, inv_hw=1.0 / HW)
    out = pl.pallas_call(
        kernel,
        out_shape=jax.ShapeDtypeStruct((n_steps, tb * C, HW), dtype),
        grid=(n_steps,),
        in_specs=[
            pl.BlockSpec((None, tb * C, HW), lambda i: (i, 0, 0)),      # x block
            pl.BlockSpec((C + 1, 2 * Cr + 1), lambda i: (0, 0)),        # packed params
        ],
        out_specs=pl.BlockSpec((None, tb * C, HW), lambda i: (i, 0, 0)),
        compiler_params=pltpu.CompilerParams(
            dimension_semantics=("parallel",),
            vmem_limit_bytes=32 * 1024 * 1024,
        ),
    )(x3, packed)
    return out.reshape(N, C, H, W)


# --------------------------- pure-JAX reference -------------------------------

def se_block_ref(x, params):
    pooled = jnp.mean(x, axis=(2, 3))                      # (N, C)
    w1 = params["w1"][:, :, 0, 0]                          # (Cr, C)
    w2 = params["w2"][:, :, 0, 0]                          # (C, Cr)
    h = pooled @ w1.T + params["b1"][None, :]
    h = h * jax.nn.sigmoid(h)                              # SiLU
    g = h @ w2.T + params["b2"][None, :]
    g = jax.nn.sigmoid(g)
    return x * g[:, :, None, None]


# ---------------------------------- main --------------------------------------

if __name__ == "__main__":
    # Shapes consistent with SEBlock(channels=4, reduction=4):
    # x = (N=2, C=4, H=16, W=16), hidden channels Cr = 1.
    channels, reduction = 4, 4
    Cr = channels // reduction

    key = jax.random.PRNGKey(0)
    kx, k1, k2, k3, k4 = jax.random.split(key, 5)
    x = jax.random.normal(kx, (2, channels, 16, 16), jnp.float32)
    params = {
        "w1": 0.5 * jax.random.normal(k1, (Cr, channels, 1, 1), jnp.float32),
        "b1": 0.1 * jax.random.normal(k2, (Cr,), jnp.float32),
        "w2": 0.5 * jax.random.normal(k3, (channels, Cr, 1, 1), jnp.float32),
        "b2": 0.1 * jax.random.normal(k4, (channels,), jnp.float32),
    }

    out = jax.block_until_ready(se_block_pallas(x, params))
    ref = jax.block_until_ready(se_block_ref(x, params))

    assert out.shape == ref.shape == (2, channels, 16, 16)
    assert out.dtype == x.dtype
    assert jnp.allclose(out, ref, atol=1e-4, rtol=1e-4)

    print("KERNEL_OK")
</pallas_src>

<mosaic_0001>
module attributes {stable_mosaic.version = 11 : i64} {
  func.func @_se_kernel(%arg0: i32, %arg1: memref<1x4x256xf32, #tpu.memory_space<vmem>>, %arg2: memref<5x3xf32, #tpu.memory_space<vmem>>, %arg3: memref<1x4x256xf32, #tpu.memory_space<vmem>>) attributes {dimension_semantics = [#tpu.dimension_semantics<parallel>], iteration_bounds = array<i64: 2>, scalar_prefetch = 0 : i64, scratch_operands = 0 : i64, tpu.core_type = #tpu.core_type<tc>, window_params = [{transform_indices = @transform_0, window_bounds = array<i64: 1, 4, 256>}, {pipeline_mode = #tpu.pipeline_mode<synchronous>, transform_indices = @transform_1, window_bounds = array<i64: 5, 3>}, {transform_indices = @transform_2, window_bounds = array<i64: 1, 4, 256>}]} {
    %c0 = arith.constant 0 : index
    %c0_0 = arith.constant 0 : index
    %c0_1 = arith.constant 0 : index
    %0 = vector.load %arg1[%c0, %c0_0, %c0_1] : memref<1x4x256xf32, #tpu.memory_space<vmem>>, vector<1x4x256xf32>
    %1 = vector.shape_cast %0 : vector<1x4x256xf32> to vector<4x256xf32>
    %cst = arith.constant dense<0.000000e+00> : vector<4xf32>
    %2 = vector.multi_reduction <add>, %1, %cst [1] : vector<4x256xf32> to vector<4xf32>
    %3 = vector.shape_cast %2 : vector<4xf32> to vector<4x1xf32>
    %cst_2 = arith.constant 3.906250e-03 : f32
    %4 = vector.broadcast %cst_2 : f32 to vector<4x1xf32>
    %5 = arith.mulf %3, %4 : vector<4x1xf32>
    %c0_3 = arith.constant 0 : index
    %c0_4 = arith.constant 0 : index
    %6 = vector.load %arg2[%c0_3, %c0_4] : memref<5x3xf32, #tpu.memory_space<vmem>>, vector<4x1xf32>
    %c0_5 = arith.constant 0 : index
    %c1 = arith.constant 1 : index
    %7 = vector.load %arg2[%c0_5, %c1] : memref<5x3xf32, #tpu.memory_space<vmem>>, vector<4x1xf32>
    %c0_6 = arith.constant 0 : index
    %c2 = arith.constant 2 : index
    %8 = vector.load %arg2[%c0_6, %c2] : memref<5x3xf32, #tpu.memory_space<vmem>>, vector<4x1xf32>
    %c4 = arith.constant 4 : index
    %c0_7 = arith.constant 0 : index
    %9 = vector.load %arg2[%c4, %c0_7] : memref<5x3xf32, #tpu.memory_space<vmem>>, vector<1x1xf32>
    %10 = arith.mulf %5, %6 : vector<4x1xf32>
    %cst_8 = arith.constant dense<0.000000e+00> : vector<1xf32>
    %11 = vector.multi_reduction <add>, %10, %cst_8 [0] : vector<4x1xf32> to vector<1xf32>
    %12 = vector.shape_cast %11 : vector<1xf32> to vector<1x1xf32>
    %13 = arith.addf %12, %9 : vector<1x1xf32>
    %cst_9 = arith.constant 0.000000e+00 : f32
    %14 = vector.broadcast %cst_9 : f32 to vector<1x1xf32>
    %15 = arith.subf %14, %13 : vector<1x1xf32>
    %16 = math.exp %15 : vector<1x1xf32>
    %cst_10 = arith.constant 1.000000e+00 : f32
    %17 = vector.broadcast %cst_10 : f32 to vector<1x1xf32>
    %18 = arith.addf %17, %16 : vector<1x1xf32>
    %cst_11 = arith.constant 1.000000e+00 : f32
    %19 = vector.broadcast %cst_11 : f32 to vector<1x1xf32>
    %20 = arith.divf %19, %18 : vector<1x1xf32>
    %21 = arith.mulf %13, %20 : vector<1x1xf32>
    %22 = vector.broadcast %21 : vector<1x1xf32> to vector<4x1xf32>
    %23 = arith.mulf %22, %7 : vector<4x1xf32>
    %cst_12 = arith.constant dense<0.000000e+00> : vector<4xf32>
    %24 = vector.multi_reduction <add>, %23, %cst_12 [1] : vector<4x1xf32> to vector<4xf32>
    %25 = vector.shape_cast %24 : vector<4xf32> to vector<4x1xf32>
    %26 = arith.addf %25, %8 : vector<4x1xf32>
    %cst_13 = arith.constant 0.000000e+00 : f32
    %27 = vector.broadcast %cst_13 : f32 to vector<4x1xf32>
    %28 = arith.subf %27, %26 : vector<4x1xf32>
    %29 = math.exp %28 : vector<4x1xf32>
    %cst_14 = arith.constant 1.000000e+00 : f32
    %30 = vector.broadcast %cst_14 : f32 to vector<4x1xf32>
    %31 = arith.addf %30, %29 : vector<4x1xf32>
    %cst_15 = arith.constant 1.000000e+00 : f32
    %32 = vector.broadcast %cst_15 : f32 to vector<4x1xf32>
    %33 = arith.divf %32, %31 : vector<4x1xf32>
    %34 = vector.broadcast %33 : vector<4x1xf32> to vector<4x256xf32>
    %35 = arith.mulf %1, %34 : vector<4x256xf32>
    %c0_16 = arith.constant 0 : index
    %c0_17 = arith.constant 0 : index
    %c0_18 = arith.constant 0 : index
    %36 = vector.load %arg3[%c0_16, %c0_17, %c0_18] : memref<1x4x256xf32, #tpu.memory_space<vmem>>, vector<1x4x256xf32>
    %37 = vector.shape_cast %36 : vector<1x4x256xf32> to vector<4x256xf32>
    %38 = vector.shape_cast %35 : vector<4x256xf32> to vector<1x4x256xf32>
    tpu.vector_store %arg3[%c0_16, %c0_17, %c0_18], %38 {strides = array<i32>} : memref<1x4x256xf32, #tpu.memory_space<vmem>>, vector<1x4x256xf32>,
    return
  }
  func.func @transform_0(%arg0: i32) -> (i32, i32, i32) {
    %c0_i32 = arith.constant 0 : i32
    %c0_i32_0 = arith.constant 0 : i32
    %c0_i32_1 = arith.constant 0 : i32
    return %arg0, %c0_i32, %c0_i32_0 : i32, i32, i32
  }
  func.func @transform_1(%arg0: i32) -> (i32, i32) {
    %c0_i32 = arith.constant 0 : i32
    %c0_i32_0 = arith.constant 0 : i32
    %c0_i32_1 = arith.constant 0 : i32
    return %c0_i32, %c0_i32_0 : i32, i32
  }
  func.func @transform_2(%arg0: i32) -> (i32, i32, i32) {
    %c0_i32 = arith.constant 0 : i32
    %c0_i32_0 = arith.constant 0 : i32
    %c0_i32_1 = arith.constant 0 : i32
    return %arg0, %c0_i32, %c0_i32_0 : i32, i32, i32
  }
}

</mosaic_0001>

<bundles_post_ra>
// kernel: tpu_custom_call.1
= control target key start
LH: loop header
LB: loop body
LE: loop exit
PB: predicated region body
PF: predicated region fallthrough
CT: control target
= control target key end

     0   :  { %7 = vsyncpa [#allocation3], 0  ;;  %s670_s0 = inlined_call_operand.hbm [shape: f32[2,4,256], index: 0, kind: input, shape index: {}]   ;;  %s671_s1 = inlined_call_operand.vmem [shape: f32[5,3], index: 1, kind: input, shape index: {}]   ;;  %s672_s2 = inlined_call_operand.hbm [shape: f32[2,4,256], index: 2, kind: output, shape index: {}]  }
   0x1   :  { %9 = vsyncpa [#allocation3 + $0x1], 0 }
   0x2   :  { %10 = vsyncpa [#allocation4], 0 }
   0x3   :  { %12 = vsyncpa [#allocation4 + $0x1], 0  ;;  %s529_s9 = smov 0   ;;  %s531_s10 = smov 0  }
   0x4   :  { %s533_s11 = smov 0   ;;  %s535_s12 = smov 0  }
   0x5 LB: > { %s550_s13 = sadd.s32 4294967295, %s508_s12   ;;  %s336_s14 = sadd.s32 4294967294, %s508_s12   ;;  %s508_s12 = sphi %s535_s12, %s682_s12   ;;  %s504_s11 = sphi %s533_s11, %s681_s11   ;;  %s500_s10 = sphi %s531_s10, %s680_s10   ;;  %s496_s9 = sphi %s529_s9, %s679_s9  }
   0x6   : > { %s554_s15 = sadd.s32 1, %s508_s12   ;;  %s25_s16 = sadd.s32 1, %s504_s11 }
   0x7   : > { %s22_s17 = ssub.s32 %s508_s12, %s554_s15  ;;  %p32_p0 = scmp.ne.s32.totalorder %s504_s11, %s500_s10 }
   0x8   : > { %p23_p1 = scmp.eq.s32.totalorder %s22_s17, 0  ;;  %p33_p2 = scmp.eq.s32.totalorder %s508_s12, 0 }
   0x9   : > { %p38_p3 = scmp.ne.s32.totalorder %s500_s10, %s496_s9  ;;  %p39_p4 = scmp.eq.s32.totalorder %s550_s13, 0 }
   0xa   : > { %s566_s18 = scalar_select %p23_p1, %s504_s11, %s25_s16  }
   0xb   : > { %p568_p5 = por %p33_p2, %p32_p0  ;;  %p572_p6 = por %p39_p4, %p38_p3 }
   0xc   : > { %p83_p7 = scmp.eq.s32.totalorder %s550_s13, 1  ;;  %p89_p8 = scmp.eq.s32.totalorder %s336_s14, 1 }
   0xd   : > { %p364_p10 = scmp.lt.s32.totalorder %s508_s12, 2  ;;  %s112_s23 = sand.u32 1, %s504_s11  }
   0xe   : > { %p579_p11 = por %p83_p7, %p32_p0  ;;  %p583_p12 = por %p89_p8, %p38_p3 }
   0xf   : > { %s350_s24 = sshll.u32 %s508_s12, 3  ;;  %s339_s25 = sshll.u32 %s112_s23, 3 }
  0x10   : > { %s121_s28 = scalar_lea.hbm %s670_s0, %s350_s24  ;;  %s116_s30 = scalar_lea.vmem [#allocation2], %s339_s25 }
  0x11   : > { %s123_s29 = sshll.u32 %s121_s28, 4  ;;  %s125_s3 = sshll.u32 %s116_s30, 4  ;;  %s124_s29 = int_to_ptr.hbm [resolvable:$true] %s123_s29  ;;  %s126_s3 = int_to_ptr.vmem [resolvable:$true] %s125_s3 }
  0x12   : > { %p594_p13 = pnand %p364_p10, %p568_p5  ;;  %p342_p0 = scmp.ge.s32.totalorder %s508_s12, 1 }
  0x13   : > { %p130_p1 = scmp.lt.s32.totalorder %s508_s12, 3  ;;  %s113_s5 = scalar_lea.sflag [#allocation3], %s112_s23 }
  0x14   : > { %s412_s6 = sshra.s32 %s124_s29, 4  ;;  %p416_p3 = pneg %p594_p13  ;;  %s413_s6 = int_to_ptr.hbm [resolvable:$true] %s412_s6 }
  0x15   : > { %s414_s7 = scalar_lea.hbm %s413_s6, 8  ;;  %s419_s16 = scalar_lea.hbm %s670_s0, 16 }
  0x16   : > { %p415_p2 = scmp.ne.s32.totalorder %s413_s6, %s414_s7  ;;  %p420_p5 = scmp.lt.s32.totalorder %s413_s6, %s670_s0 }
  0x17   : > { %p421_p8 = scmp.lt.s32.totalorder %s419_s16, %s414_s7 }
  0x18   : > { %p417_p4 = pnand %p416_p3, %p415_p2 }
  0x19   : > { %p422_p10 = por %p421_p8, %p420_p5 }
  0x1a   : > { %p418_p7 = pneg %p417_p4 }
  0x1c   : > { %p423_p9 = pnand %p422_p10, %p418_p7 }
  0x1e   : > { %426 = shalt.err (!%p423_p9)
}
  0x1f   : > { %359 = dma.hbm_to_vmem [thread:$0]  (!%p594_p13), %s124_s29, 128, %s126_s3, %s113_s5  }
  0x20   : > { %p131_p2 = pnand %p342_p0, %p130_p1 }
  0x21   : > { %s615_s23 = sand.u32 (!%p131_p2), 1, %s500_s10  }
  0x22   : > { %134 = sbr.rel (%p131_p2) target bundleno = 377 (0x179), region = 28  ;;  %s343_s24 = sshll.u32 (!%p131_p2), %s615_s23, 3 }
  0x23   : > { %s137_s25 = scalar_lea.sflag (!%p131_p2), [#allocation3], %s615_s23  ;;  %s140_s26 = scalar_lea.vmem (!%p131_p2), [#allocation2], %s343_s24 }
  0x27   : > { %487 = dma.done.wait (%p572_p6), %s137_s25, 128  }
  0x28   : > { %489 = vsyncadd (%p572_p6), %s137_s25, 4294967168  ;;  %v625_v0 = vld [vmem:[%s140_s26] sm:$0xff]  ;;  %v176_v1 = vld [vmem:[%s671_s1] sm:$0xf]  ;;  %s510_s29 = smov 126   ;;  %vm169_vm0 = vcmask 1043456  }
  0x29   : > { %164 = vst [vmem:[#allocation1] ss:$2 sm:$0xff] %v625_v0  ;;  %215 = vrot.lane.b32.xlu1 %v176_v1, %s510_s29  ;;  %s511_s30 = smov 127   ;;  %vm179_vm1 = vcmask 3072   ;;  %v177_v16 = vld [vmem:[%s671_s1 + $0x4] sm:$0x1] }
  0x2a   : > { %v512_v25 = vmov 0   ;;  %v513_v54 = vmov 839922192   ;;  %s351_s4 = sshll.u32 %s550_s13, 3  ;;  %s161_s8 = scalar_lea.vmem [#allocation5], %s343_s24 }
  0x2b   : > { %402 = vset.pattern.permute.xlu1 %v512_v25  ;;  %403 = vset.pattern.permute.xlu0 %v512_v25  ;;  %v243_v55 = vunpack.c.l.s4 %v513_v54  ;;  %s261_s7 = scalar_lea.hbm %s672_s2, %s351_s4  ;;  %s263_s14 = sshll.u32 %s161_s8, 4  ;;  %s264_s14 = int_to_ptr.vmem [resolvable:$true] %s263_s14 }
  0x2c   : > { %s265_s16 = sshll.u32 %s261_s7, 4  ;;  %s250_s17 = scalar_lea.sflag [#allocation4], %s615_s23  ;;  %s266_s16 = int_to_ptr.hbm [resolvable:$true] %s265_s16 }
  0x2d   : > { %v244_v56 = vunpack.c.0.s8 %v243_v55  ;;  %s456_s19 = sshra.s32 %s266_s16, 4  ;;  %s462_s24 = scalar_lea.hbm %s672_s2, 16  ;;  %s457_s19 = int_to_ptr.hbm [resolvable:$true] %s456_s19 }
  0x2e   : > { %s458_s13 = scalar_lea.hbm %s457_s19, 8  ;;  %p463_p0 = scmp.lt.s32.totalorder %s457_s19, %s672_s2 }
  0x2f   : > { %p459_p6 = scmp.ne.s32.totalorder %s457_s19, %s458_s13  ;;  %p464_p1 = scmp.lt.s32.totalorder %s462_s24, %s458_s13 }
  0x30   : > { %v165_v2 = vld.sshfl [vmem:[#allocation1] sm:$0xff pattern:$0x75316420]  ;;  %v166_v3 = vld.sshfl [vmem:[#allocation1 + $0x8] sm:$0xff pattern:$0x75316420] }
  0x31   : > { %v170_v4 = vsel %vm169_vm0, %v165_v2, 0.0  ;;  %v171_v5 = vsel %vm169_vm0, %v166_v3, 0.0  ;;  %p460_p9 = pnand %p459_p6, %p579_p11  ;;  %p465_p3 = por %p464_p1, %p463_p0 }
  0x32   : > { %v172_v6 = vadd.f32 %v171_v5, %v170_v4 }
  0x33   : > { %p461_p13 = pneg %p460_p9 }
  0x34   : > { %173 = vadd.xlane.f32.xlu0 %v172_v6 }
  0x35   : > { %p466_p4 = pnand %p465_p3, %p461_p13 }
  0x48   : > { %210 = vrot.lane.b32.xlu0 %v176_v1, %s511_s30 }
  0x9b   : > { %v216_v37 = vpop.permute.xlu1 %215 }
  0xa7   : > { %v174_v7 = vpop.xlane.xlu0 %173 }
  0xa8   : > { %v175_v8 = vmul.f32 0.00390625, %v174_v7 }
  0xaa   : > { %v178_v9 = vmul.f32 %v176_v1, %v175_v8 }
  0xac   : > { %v180_v10 = vsel %vm179_vm1, %v178_v9, 0.0 }
  0xad   : > { %v181_v11 = vrot.slane %v180_v10, 4 }
  0xaf   : > { %v182_v12 = vadd.f32 %v181_v11, %v180_v10 }
  0xb1   : > { %v183_v13 = vrot.slane %v182_v12, 2 }
  0xb3   : > { %v184_v14 = vadd.f32 %v183_v13, %v182_v12 }
  0xb5   : > { %v185_v15 = vrot.slane %v184_v14, 1 }
  0xb7   : > { %v186_v17 = vadd.f32 %v185_v15, %v184_v14 }
  0xb9   : > { %v187_v18 = vadd.f32 %v186_v17, %v177_v16 }
  0xba   : > { %v211_v35 = vpop.permute.xlu0 %210 }
  0xbb   : > { %v188_v19 = vsub.f32 0.0, %v187_v18 }
  0xbd   : > { %v189_v20 = vmul.f32 1.442695, %v188_v19 }
  0xbf   : > { %404 = vpow2.f32 %v189_v20 }
  0xc5   : > { %v405_v21 = vpop.eup %404 }
  0xc6   : > { %v191_v22 = vadd.f32 1.0, %v405_v21 }
  0xc8   : > { %406 = vrcp.f32 %v191_v22  ;;  %v203_v27 = vand.u32 2147483648, %v191_v22  ;;  %v201_v29 = vand.u32 2147483647, %v191_v22  ;;  %vm197_vm3 = vweird.f32 %v191_v22 }
  0xca   : > { %v204_v31 = vor.u32 1.1754944e-38, %v203_v27  ;;  %vm202_vm5 = vcmp.eq.f32.partialorder %v201_v29, 8.507059e+37 }
  0xce   : > { %v407_v23 = vpop.eup %406 }
  0xcf   : > { %v193_v24 = vmul.f32 %v407_v23, %v191_v22  ;;  %vm198_vm2 = vweird.f32 %v407_v23 }
  0xd0   : > { %vm199_vm4 = vmor %vm197_vm3, %vm198_vm2 }
  0xd1   : > { %v194_v26 = vsub.f32 1.0, %v193_v24 }
  0xd3   : > { %v195_v28 = vmul.f32 %v407_v23, %v194_v26 }
  0xd5   : > { %v196_v30 = vadd.f32 %v407_v23, %v195_v28 }
  0xd7   : > { %v200_v32 = vsel %vm199_vm4, %v407_v23, %v196_v30 }
  0xd8   : > { %v205_v33 = vsel %vm202_vm5, %v204_v31, %v200_v32 }
  0xd9   : > { %v207_v34 = vmul.f32 %v205_v33, %v187_v18 }
  0xdb   : > { %v208_v36 = vperm.slane %v207_v34, 0 }
  0xdd   : > { %v213_v38 = vmul.f32 %v211_v35, %v208_v36 }
  0xdf   : > { %v218_v39 = vadd.f32 %v216_v37, %v213_v38 }
  0xe1   : > { %v219_v40 = vsub.f32 0.0, %v218_v39 }
  0xe3   : > { %v220_v41 = vmul.f32 1.442695, %v219_v40 }
  0xe5   : > { %408 = vpow2.f32 %v220_v41 }
  0xeb   : > { %v409_v42 = vpop.eup %408 }
  0xec   : > { %v222_v43 = vadd.f32 1.0, %v409_v42 }
  0xee   : > { %410 = vrcp.f32 %v222_v43  ;;  %v234_v47 = vand.u32 2147483648, %v222_v43  ;;  %v232_v49 = vand.u32 2147483647, %v222_v43  ;;  %vm228_vm7 = vweird.f32 %v222_v43 }
  0xf0   : > { %v235_v51 = vor.u32 1.1754944e-38, %v234_v47  ;;  %vm233_vm9 = vcmp.eq.f32.partialorder %v232_v49, 8.507059e+37 }
  0xf4   : > { %v411_v44 = vpop.eup %410 }
  0xf5   : > { %v224_v45 = vmul.f32 %v411_v44, %v222_v43  ;;  %vm229_vm6 = vweird.f32 %v411_v44 }
  0xf6   : > { %vm230_vm8 = vmor %vm228_vm7, %vm229_vm6 }
  0xf7   : > { %v225_v46 = vsub.f32 1.0, %v224_v45 }
  0xf9   : > { %v226_v48 = vmul.f32 %v411_v44, %v225_v46 }
  0xfb   : > { %v227_v50 = vadd.f32 %v411_v44, %v226_v48 }
  0xfd   : > { %v231_v52 = vsel %vm230_vm8, %v411_v44, %v227_v50 }
  0xfe   : > { %v236_v53 = vsel %vm233_vm9, %v235_v51, %v231_v52 }
  0xff   : > { %240 = vperm.xlu1 %402, %v236_v53  }
 0x171   : > { %v241_v57 = vpop.permute.xlu1 %240 }
 0x172   : > { %v245_v58 = vperm.slane %v241_v57, %v244_v56 }
 0x174   : > { %v247_v59 = vmul.f32 %v245_v58, %v625_v0 }
 0x176   : > { %248 = vst [vmem:[%s161_s8] sm:$0xff] %v247_v59 }
 0x177   : > { %469 = shalt.err (!%p466_p4)
}
 0x178   : > { %354 = dma.vmem_to_hbm [thread:$0]  (%p579_p11), %s264_s14, 128, %s266_s16, %s250_s17  }
 0x179 PF: > { %s277_s23 = sand.u32 1, %s496_s9   ;;  %p678_p7 = scmp.ge.s32.totalorder %s508_s12, 2 }
 0x17a   : > { %s278_s29 = scalar_lea.sflag [#allocation4], %s277_s23 }
 0x17b   : > { %p361_p5 = pnand %p678_p7, %p583_p12 }
 0x17d   : > { %p362_p8 = pneg %p361_p5 }
 0x17f   : > { %491 = dma.done.wait (%p362_p8), %s278_s29, 128  }
 0x180   : > { %493 = vsyncadd (%p362_p8), %s278_s29, 4294967168  ;;  %p15_p10 = scmp.ge.s32.totalorder %s554_s15, 4   ;;  %s679_s9 = smov %s500_s10 }
 0x181   : > { %s680_s10 = smov %s504_s11  ;;  %s681_s11 = smov %s566_s18 }
 0x182   : > { %s682_s12 = smov %s554_s15  ;;  %17 = sbr.rel (!%p15_p10) target bundleno = 5 (0x5), region = 73 }
 0x187   :  { %284 = vsyncpa [#allocation3], 1 }
 0x188   :  { %286 = vsyncpa [#allocation3 + $0x1], 1 }
 0x189   :  { %287 = vsyncpa [#allocation4], 1 }
 0x18a   :  { %289 = vsyncpa [#allocation4 + $0x1], 1 }

</bundles_post_ra>
